<compile_context>
chip_gen: v5e
topology: v5e:2x2
jax: 0.10.0
libtpu: 0.0.40
codegen_flags: <defaults>
</compile_context>

<pallas_src>
import math

import jax
import jax.numpy as jnp
from jax.experimental import pallas as pl
from jax.experimental.pallas import tpu as pltpu

LEAK = 0.1
CLAMP_LO, CLAMP_HI = -5.0, 5.0
HID = 100
LANE = 128
MIN_TILE_B = 128                   # minimum batch tile (sublane/lane friendly)
TILE_B_PREF = 512                  # preferred batch tile (amortizes step overhead)
COMPUTE_DTYPE = jnp.bfloat16       # MXU-native on v5e/v6e/v7x; f32 accumulate


def _round_up(x, m):
    return ((x + m - 1) // m) * m


def _leaky_relu(x):
    # leak < 1  =>  max(x, leak*x) == LeakyReLU(x); one mul + one max per vreg.
    return jnp.maximum(x, LEAK * x)


def prednet_kernel(x_ref,
                   w1_ref, b1_ref,
                   w2_ref, b2_ref,
                   w3_ref, b3_ref,
                   out_ref):
    # Layer 1: input already bf16, clamped & concatenated in the wrapper.
    h = jnp.dot(x_ref[...], w1_ref[...],
                preferred_element_type=jnp.float32) + b1_ref[...]
    h = _leaky_relu(h)

    # Layer 2.
    h = jnp.dot(h.astype(COMPUTE_DTYPE), w2_ref[...],
                preferred_element_type=jnp.float32) + b2_ref[...]
    h = _leaky_relu(h)

    # Head.
    y = jnp.dot(h.astype(COMPUTE_DTYPE), w3_ref[...],
                preferred_element_type=jnp.float32) + b3_ref[...]
    out_ref[...] = y.astype(out_ref.dtype)


def _choose_tile_b(batch, preferred):
    """Largest tile <= preferred, capped so the grid keeps >=2 steps
    (v7x megacore) whenever the batch is big enough."""
    b128 = _round_up(max(batch, 1), MIN_TILE_B)
    tile_b = min(preferred, b128)
    if tile_b >= b128 and b128 >= 2 * MIN_TILE_B:
        tile_b = max(MIN_TILE_B, (b128 // 2 // MIN_TILE_B) * MIN_TILE_B)
    return tile_b


def prednet_forward(obs, acs, packed, *, tile_b=TILE_B_PREF):
    """obs: (B, ob_dim) f32, acs: (B, ac_dim) f32 -> (B, ob_dim) f32."""
    w1, b1, w2, b2, w3, b3 = packed
    B, ob_dim = obs.shape
    _, ac_dim = acs.shape
    in_dim = ob_dim + ac_dim
    in_pad, hid_pad = w1.shape
    ob_pad = w3.shape[1]

    tile_b = _choose_tile_b(B, tile_b)
    b_pad = _round_up(max(B, 1), tile_b)

    # Clamp applies to obs columns only; concat + lane/batch zero-pad + bf16
    # cast all fuse into this single wrapper copy.
    x = jnp.concatenate(
        [jnp.clip(obs, CLAMP_LO, CLAMP_HI), acs], axis=-1).astype(COMPUTE_DTYPE)
    x_p = jnp.zeros((b_pad, in_pad), COMPUTE_DTYPE).at[:B, :in_dim].set(x)

    grid = (b_pad // tile_b,)
    flops = 2 * b_pad * (in_pad * hid_pad + hid_pad * hid_pad + hid_pad * ob_pad)
    weight_bytes = sum(int(a.size) * a.dtype.itemsize
                       for a in (w1, b1, w2, b2, w3, b3))
    bytes_accessed = (int(x_p.size) * 2            # bf16 activation in
                      + b_pad * ob_pad * 2         # bf16 activation out
                      + weight_bytes)

    out_p = pl.pallas_call(
        prednet_kernel,
        out_shape=jax.ShapeDtypeStruct((b_pad, ob_pad), COMPUTE_DTYPE),
        grid=grid,
        in_specs=[
            pl.BlockSpec((tile_b, in_pad), lambda i: (i, 0)),     # packed input tile
            pl.BlockSpec((in_pad, hid_pad), lambda i: (0, 0)),    # W1 (resident)
            pl.BlockSpec((1, hid_pad), lambda i: (0, 0)),         # b1
            pl.BlockSpec((hid_pad, hid_pad), lambda i: (0, 0)),   # W2
            pl.BlockSpec((1, hid_pad), lambda i: (0, 0)),         # b2
            pl.BlockSpec((hid_pad, ob_pad), lambda i: (0, 0)),    # W3
            pl.BlockSpec((1, ob_pad), lambda i: (0, 0)),          # b3
        ],
        out_specs=pl.BlockSpec((tile_b, ob_pad), lambda i: (i, 0)),
        compiler_params=pltpu.CompilerParams(
            dimension_semantics=("parallel",),        # shards across v7x's 2 TCs
            vmem_limit_bytes=32 * 1024 * 1024,
        ),
        cost_estimate=pl.CostEstimate(
            flops=flops, transcendentals=0, bytes_accessed=bytes_accessed),
    )(x_p, w1, b1, w2, b2, w3, b3)

    return out_p[:B, :ob_dim].astype(jnp.float32)


def init_params(key, ob_dim, ac_dim):
    """Synthetic init mirroring the module: fc blocks scaled by
    sqrt(2)/sqrt(1+leak^2), head scaled by 0.01, zero biases. f32, unpadded."""
    in_dim = ob_dim + ac_dim
    k1, k2, k3 = jax.random.split(key, 3)
    fc_scale = math.sqrt(2.0) / math.sqrt(1.0 + LEAK ** 2)

    def dense(k, fan_in, fan_out, scale):
        w = jax.random.normal(k, (fan_in, fan_out), jnp.float32) * (scale / math.sqrt(fan_in))
        b = jnp.zeros((fan_out,), jnp.float32)
        return w, b

    w1, b1 = dense(k1, in_dim, HID, fc_scale)
    w2, b2 = dense(k2, HID, HID, fc_scale)
    w3, b3 = dense(k3, HID, ob_dim, 0.01)
    return (w1, b1, w2, b2, w3, b3)


def pack_params(params, ob_dim, ac_dim, dtype=COMPUTE_DTYPE):
    """Zero-pad every feature dim to 128-lane multiples, keep W1 as a single
    (in_pad, hid_pad) weight (concat happens in the wrapper), cast weights to
    bf16, and store biases as lane-aligned (1, pad) f32 rows."""
    w1, b1, w2, b2, w3, b3 = params
    in_dim = ob_dim + ac_dim
    in_pad = _round_up(in_dim, LANE)
    ob_pad = _round_up(ob_dim, LANE)
    hid_pad = _round_up(HID, LANE)

    w1p = jnp.zeros((in_pad, hid_pad), dtype).at[:in_dim, :HID].set(w1.astype(dtype))
    w2p = jnp.zeros((hid_pad, hid_pad), dtype).at[:HID, :HID].set(w2.astype(dtype))
    w3p = jnp.zeros((hid_pad, ob_pad), dtype).at[:HID, :ob_dim].set(w3.astype(dtype))

    b1p = jnp.zeros((1, hid_pad), jnp.float32).at[0, :HID].set(b1)
    b2p = jnp.zeros((1, hid_pad), jnp.float32).at[0, :HID].set(b2)
    b3p = jnp.zeros((1, ob_pad), jnp.float32).at[0, :ob_dim].set(b3)
    return (w1p, b1p, w2p, b2p, w3p, b3p)


def prednet_reference(obs, acs, params, dtype=COMPUTE_DTYPE):
    """Pure-JAX reference mirroring the kernel's bf16-operand / f32-accum math
    (final bf16 round-trip matches the kernel's bf16 output)."""
    w1, b1, w2, b2, w3, b3 = params
    obs = jnp.clip(obs, CLAMP_LO, CLAMP_HI)
    x = jnp.concatenate([obs, acs], axis=-1)
    h = _leaky_relu(jnp.dot(x.astype(dtype), w1.astype(dtype),
                            preferred_element_type=jnp.float32) + b1)
    h = _leaky_relu(jnp.dot(h.astype(dtype), w2.astype(dtype),
                            preferred_element_type=jnp.float32) + b2)
    y = jnp.dot(h.astype(dtype), w3.astype(dtype),
                preferred_element_type=jnp.float32) + b3
    return y.astype(dtype).astype(jnp.float32)


if __name__ == "__main__":
    key = jax.random.PRNGKey(0)
    k_obs, k_acs, k_par = jax.random.split(key, 3)

    # Small MuJoCo-like feature dims; batch sized to exercise a 2-step grid.
    B, ob_dim, ac_dim = 256, 11, 3
    obs = 6.0 * jax.random.normal(k_obs, (B, ob_dim), jnp.float32)   # exercises clamp
    acs = jax.random.normal(k_acs, (B, ac_dim), jnp.float32)

    params = init_params(k_par, ob_dim, ac_dim)
    packed = pack_params(params, ob_dim, ac_dim)

    out = prednet_forward(obs, acs, packed)
    out = jax.block_until_ready(out)

    ref = prednet_reference(obs, acs, params)
    assert out.shape == (B, ob_dim)
    assert jnp.allclose(out, ref, atol=2e-3, rtol=2e-3), \
        f"mismatch vs reference: max abs err {jnp.max(jnp.abs(out - ref))}"

    print("KERNEL_OK")
</pallas_src>

<mosaic_0001>
module attributes {stable_mosaic.version = 11 : i64} {
  func.func @prednet_kernel(%arg0: i32, %arg1: memref<128x128xbf16, #tpu.memory_space<vmem>>, %arg2: memref<128x128xbf16, #tpu.memory_space<vmem>>, %arg3: memref<1x128xf32, #tpu.memory_space<vmem>>, %arg4: memref<128x128xbf16, #tpu.memory_space<vmem>>, %arg5: memref<1x128xf32, #tpu.memory_space<vmem>>, %arg6: memref<128x128xbf16, #tpu.memory_space<vmem>>, %arg7: memref<1x128xf32, #tpu.memory_space<vmem>>, %arg8: memref<128x128xbf16, #tpu.memory_space<vmem>>) attributes {dimension_semantics = [#tpu.dimension_semantics<parallel>], iteration_bounds = array<i64: 2>, scalar_prefetch = 0 : i64, scratch_operands = 0 : i64, tpu.core_type = #tpu.core_type<tc>, window_params = [{transform_indices = @transform_0, window_bounds = array<i64: 128, 128>}, {pipeline_mode = #tpu.pipeline_mode<synchronous>, transform_indices = @transform_1, window_bounds = array<i64: 128, 128>}, {pipeline_mode = #tpu.pipeline_mode<synchronous>, transform_indices = @transform_2, window_bounds = array<i64: 1, 128>}, {pipeline_mode = #tpu.pipeline_mode<synchronous>, transform_indices = @transform_3, window_bounds = array<i64: 128, 128>}, {pipeline_mode = #tpu.pipeline_mode<synchronous>, transform_indices = @transform_4, window_bounds = array<i64: 1, 128>}, {pipeline_mode = #tpu.pipeline_mode<synchronous>, transform_indices = @transform_5, window_bounds = array<i64: 128, 128>}, {pipeline_mode = #tpu.pipeline_mode<synchronous>, transform_indices = @transform_6, window_bounds = array<i64: 1, 128>}, {transform_indices = @transform_7, window_bounds = array<i64: 128, 128>}]} {
    %c0 = arith.constant 0 : index
    %c0_0 = arith.constant 0 : index
    %0 = vector.load %arg1[%c0, %c0_0] : memref<128x128xbf16, #tpu.memory_space<vmem>>, vector<128x128xbf16>
    %c0_1 = arith.constant 0 : index
    %c0_2 = arith.constant 0 : index
    %1 = vector.load %arg2[%c0_1, %c0_2] : memref<128x128xbf16, #tpu.memory_space<vmem>>, vector<128x128xbf16>
    %cst = arith.constant dense<0.000000e+00> : vector<128x128xf32>
    %2 = tpu.matmul %0, %1, %cst {dimension_numbers = #tpu.dot_dimension_numbers<[1], [0], [0], [1], [0, 0, 1, 1], [], []>} : vector<128x128xbf16>, vector<128x128xbf16>, vector<128x128xf32> -> vector<128x128xf32>
    %c0_3 = arith.constant 0 : index
    %c0_4 = arith.constant 0 : index
    %3 = vector.load %arg3[%c0_3, %c0_4] : memref<1x128xf32, #tpu.memory_space<vmem>>, vector<1x128xf32>
    %4 = vector.broadcast %3 : vector<1x128xf32> to vector<128x128xf32>
    %5 = arith.addf %2, %4 : vector<128x128xf32>
    %cst_5 = arith.constant 1.000000e-01 : f32
    %6 = vector.broadcast %cst_5 : f32 to vector<128x128xf32>
    %7 = arith.mulf %6, %5 : vector<128x128xf32>
    %8 = arith.maximumf %5, %7 : vector<128x128xf32>
    %9 = arith.truncf %8 : vector<128x128xf32> to vector<128x128xbf16>
    %c0_6 = arith.constant 0 : index
    %c0_7 = arith.constant 0 : index
    %10 = vector.load %arg4[%c0_6, %c0_7] : memref<128x128xbf16, #tpu.memory_space<vmem>>, vector<128x128xbf16>
    %cst_8 = arith.constant dense<0.000000e+00> : vector<128x128xf32>
    %11 = tpu.matmul %9, %10, %cst_8 {dimension_numbers = #tpu.dot_dimension_numbers<[1], [0], [0], [1], [0, 0, 1, 1], [], []>} : vector<128x128xbf16>, vector<128x128xbf16>, vector<128x128xf32> -> vector<128x128xf32>
    %c0_9 = arith.constant 0 : index
    %c0_10 = arith.constant 0 : index
    %12 = vector.load %arg5[%c0_9, %c0_10] : memref<1x128xf32, #tpu.memory_space<vmem>>, vector<1x128xf32>
    %13 = vector.broadcast %12 : vector<1x128xf32> to vector<128x128xf32>
    %14 = arith.addf %11, %13 : vector<128x128xf32>
    %cst_11 = arith.constant 1.000000e-01 : f32
    %15 = vector.broadcast %cst_11 : f32 to vector<128x128xf32>
    %16 = arith.mulf %15, %14 : vector<128x128xf32>
    %17 = arith.maximumf %14, %16 : vector<128x128xf32>
    %18 = arith.truncf %17 : vector<128x128xf32> to vector<128x128xbf16>
    %c0_12 = arith.constant 0 : index
    %c0_13 = arith.constant 0 : index
    %19 = vector.load %arg6[%c0_12, %c0_13] : memref<128x128xbf16, #tpu.memory_space<vmem>>, vector<128x128xbf16>
    %cst_14 = arith.constant dense<0.000000e+00> : vector<128x128xf32>
    %20 = tpu.matmul %18, %19, %cst_14 {dimension_numbers = #tpu.dot_dimension_numbers<[1], [0], [0], [1], [0, 0, 1, 1], [], []>} : vector<128x128xbf16>, vector<128x128xbf16>, vector<128x128xf32> -> vector<128x128xf32>
    %c0_15 = arith.constant 0 : index
    %c0_16 = arith.constant 0 : index
    %21 = vector.load %arg7[%c0_15, %c0_16] : memref<1x128xf32, #tpu.memory_space<vmem>>, vector<1x128xf32>
    %22 = vector.broadcast %21 : vector<1x128xf32> to vector<128x128xf32>
    %23 = arith.addf %20, %22 : vector<128x128xf32>
    %24 = arith.truncf %23 : vector<128x128xf32> to vector<128x128xbf16>
    %c0_17 = arith.constant 0 : index
    %c0_18 = arith.constant 0 : index
    %25 = vector.load %arg8[%c0_17, %c0_18] : memref<128x128xbf16, #tpu.memory_space<vmem>>, vector<128x128xbf16>
    tpu.vector_store %arg8[%c0_17, %c0_18], %24 {strides = array<i32>} : memref<128x128xbf16, #tpu.memory_space<vmem>>, vector<128x128xbf16>,
    return
  }
  func.func @transform_0(%arg0: i32) -> (i32, i32) {
    %c0_i32 = arith.constant 0 : i32
    %c0_i32_0 = arith.constant 0 : i32
    return %arg0, %c0_i32 : i32, i32
  }
  func.func @transform_1(%arg0: i32) -> (i32, i32) {
    %c0_i32 = arith.constant 0 : i32
    %c0_i32_0 = arith.constant 0 : i32
    %c0_i32_1 = arith.constant 0 : i32
    return %c0_i32, %c0_i32_0 : i32, i32
  }
  func.func @transform_2(%arg0: i32) -> (i32, i32) {
    %c0_i32 = arith.constant 0 : i32
    %c0_i32_0 = arith.constant 0 : i32
    %c0_i32_1 = arith.constant 0 : i32
    return %c0_i32, %c0_i32_0 : i32, i32
  }
  func.func @transform_3(%arg0: i32) -> (i32, i32) {
    %c0_i32 = arith.constant 0 : i32
    %c0_i32_0 = arith.constant 0 : i32
    %c0_i32_1 = arith.constant 0 : i32
    return %c0_i32, %c0_i32_0 : i32, i32
  }
  func.func @transform_4(%arg0: i32) -> (i32, i32) {
    %c0_i32 = arith.constant 0 : i32
    %c0_i32_0 = arith.constant 0 : i32
    %c0_i32_1 = arith.constant 0 : i32
    return %c0_i32, %c0_i32_0 : i32, i32
  }
  func.func @transform_5(%arg0: i32) -> (i32, i32) {
    %c0_i32 = arith.constant 0 : i32
    %c0_i32_0 = arith.constant 0 : i32
    %c0_i32_1 = arith.constant 0 : i32
    return %c0_i32, %c0_i32_0 : i32, i32
  }
  func.func @transform_6(%arg0: i32) -> (i32, i32) {
    %c0_i32 = arith.constant 0 : i32
    %c0_i32_0 = arith.constant 0 : i32
    %c0_i32_1 = arith.constant 0 : i32
    return %c0_i32, %c0_i32_0 : i32, i32
  }
  func.func @transform_7(%arg0: i32) -> (i32, i32) {
    %c0_i32 = arith.constant 0 : i32
    %c0_i32_0 = arith.constant 0 : i32
    return %arg0, %c0_i32 : i32, i32
  }
}

</mosaic_0001>

<bundles_post_ra>
// kernel: tpu_custom_call.1
= control target key start
LH: loop header
LB: loop body
LE: loop exit
PB: predicated region body
PF: predicated region fallthrough
CT: control target
= control target key end

     0   :  { %s1816_s0 = inlined_call_operand.hbm [shape: bf16[256,128], index: 0, kind: input, shape index: {}]   ;;  %s1817_s1 = inlined_call_operand.hbm [shape: bf16[128,128], index: 1, kind: input, shape index: {}]   ;;  %s1818_s2 = inlined_call_operand.vmem [shape: f32[1,128], index: 2, kind: input, shape index: {}]   ;;  %s1819_s3 = inlined_call_operand.hbm [shape: bf16[128,128], index: 3, kind: input, shape index: {}]   ;;  %s1820_s4 = inlined_call_operand.vmem [shape: f32[1,128], index: 4, kind: input, shape index: {}]   ;;  %s1821_s5 = inlined_call_operand.hbm [shape: bf16[128,128], index: 5, kind: input, shape index: {}]   ;;  %s1822_s6 = inlined_call_operand.vmem [shape: f32[1,128], index: 6, kind: input, shape index: {}]   ;;  %s1823_s7 = inlined_call_operand.hbm [shape: bf16[256,128], index: 7, kind: output, shape index: {}]  }
   0x1   :  { %1826 = sst [smem:[#allocation15_spill]] %s1817_s1 }
   0x2   :  { %12 = vsyncpa [#allocation3], 0 }
   0x3   :  { %14 = vsyncpa [#allocation3 + $0x1], 0 }
   0x4   :  { %15 = vsyncpa [#allocation6], 0 }
   0x5   :  { %16 = vsyncpa [#allocation9], 0 }
   0x6   :  { %17 = vsyncpa [#allocation4], 0 }
   0x7   :  { %19 = vsyncpa [#allocation4 + $0x1], 0  ;;  %s1576_s24 = smov 0   ;;  %s1578_s25 = smov 0  }
   0x8   :  { %s1580_s26 = smov 0   ;;  %s1582_s27 = smov 0  }
   0x9 LB: > { %s1597_s28 = sadd.s32 4294967295, %s1527_s27   ;;  %s996_s29 = sadd.s32 4294967294, %s1527_s27   ;;  %s1527_s27 = sphi %s1582_s27, %s1840_s27   ;;  %s1523_s26 = sphi %s1580_s26, %s1839_s26   ;;  %s1519_s25 = sphi %s1578_s25, %s1838_s25   ;;  %s1515_s24 = sphi %s1576_s24, %s1837_s24  }
   0xa   : > { %p45_p0 = scmp.ne.s32.totalorder %s1519_s25, %s1515_s24  ;;  %p46_p1 = scmp.eq.s32.totalorder %s1597_s28, 0 }
   0xb   : > { %p195_p2 = scmp.eq.s32.totalorder %s1597_s28, 1  ;;  %p201_p3 = scmp.eq.s32.totalorder %s996_s29, 1 }
   0xc   : > { %p1606_p4 = por %p46_p1, %p45_p0  ;;  %p997_p5 = scmp.ge.s32.totalorder %s1527_s27, 1 }
   0xd   : > { %p1611_p6 = por %p201_p3, %p45_p0  ;;  %p208_p7 = scmp.lt.s32.totalorder %s1527_s27, 3 }
   0xe   : > { %s1829_s1 = sld [smem:[#allocation15_spill]]  ;;  %s1529_s13 = smov [#allocation5]  }
   0xf   : > { %p1619_p8 = pnand %p997_p5, %p208_p7  ;;  %s221_s14 = sshll.u32 %s1529_s13, 4  ;;  %s222_s14 = int_to_ptr.vmem [resolvable:$true] %s221_s14 }
  0x10   : > { %s236_s18 = sshll.u32 %s1819_s3, 4  ;;  %s1824_s19 = smov 64   ;;  %s237_s18 = int_to_ptr.hbm [resolvable:$true] %s236_s18 }
  0x11   : > { %p1265_p9 = pneg %p1619_p8  ;;  %s1825_s20 = smov 4  }
  0x12   : > { %s1532_s21 = smov [#allocation7]   ;;  %s253_s9 = sshll.u32 %s1821_s5, 4  ;;  %s254_s9 = int_to_ptr.hbm [resolvable:$true] %s253_s9 }
  0x13   : > { %p1627_p10 = pnand %p1265_p9, %p46_p1  ;;  %s238_s22 = sshll.u32 %s1532_s21, 4  ;;  %s239_s22 = int_to_ptr.vmem [resolvable:$true] %s238_s22 }
  0x14   : > { %s219_s11 = sshll.u32 %s1829_s1, 4  ;;  %s1533_s10 = smov [#allocation8]   ;;  %s220_s11 = int_to_ptr.hbm [resolvable:$true] %s219_s11 }
  0x15   : > { %1268 = dma.hbm_to_vmem [thread:$0]  (!%p1627_p10), %s220_s11, 1024, %s222_s14, [#allocation6], %s1824_s19, %s1824_s19, %s1825_s20  }
  0x16   : > { %1271 = dma.hbm_to_vmem [thread:$0]  (!%p1627_p10), %s237_s18, 1024, %s239_s22, [#allocation6], %s1824_s19, %s1824_s19, %s1825_s20  }
  0x17   : > { %s255_s11 = sshll.u32 %s1533_s10, 4  ;;  %s1649_s13 = sadd.s32 1, %s1527_s27   ;;  %s256_s11 = int_to_ptr.vmem [resolvable:$true] %s255_s11 }
  0x18   : > { %1274 = dma.hbm_to_vmem [thread:$0]  (!%p1627_p10), %s254_s9, 1024, %s256_s11, [#allocation9], %s1824_s19, %s1824_s19, %s1825_s20  }
  0x19   : > { %s29_s14 = ssub.s32 %s1527_s27, %s1649_s13  ;;  %s32_s16 = sadd.s32 1, %s1523_s26 }
  0x1a   : > { %p30_p12 = scmp.eq.s32.totalorder %s29_s14, 0  ;;  %p39_p13 = scmp.ne.s32.totalorder %s1523_s26, %s1519_s25 }
  0x1b   : > { %p40_p0 = scmp.eq.s32.totalorder %s1527_s27, 0  ;;  %p1286_p5 = scmp.lt.s32.totalorder %s1527_s27, 2 }
  0x1c   : > { %s1663_s17 = scalar_select %p30_p12, %s1523_s26, %s32_s16  }
  0x1d   : > { %p1667_p3 = por %p195_p2, %p39_p13  ;;  %s272_s21 = sand.u32 1, %s1523_s26  }
  0x1e   : > { %s1144_s15 = sshll.u32 %s1527_s27, 6  ;;  %p41_p7 = por %p40_p0, %p39_p13 }
  0x1f   : > { %s1002_s22 = sshll.u32 %s272_s21, 6  ;;  %s281_s9 = scalar_lea.hbm %s1816_s0, %s1144_s15 }
  0x20   : > { %s282_s10 = sshll.u32 %s281_s9, 4  ;;  %s276_s11 = scalar_lea.vmem [#allocation2], %s1002_s22  ;;  %s283_s10 = int_to_ptr.hbm [resolvable:$true] %s282_s10 }
  0x21   : > { %s284_s14 = sshll.u32 %s276_s11, 4  ;;  %p1677_p9 = pnand %p1286_p5, %p41_p7  ;;  %s285_s14 = int_to_ptr.vmem [resolvable:$true] %s284_s14 }
  0x22   : > { %s273_s19 = scalar_lea.sflag [#allocation3], %s272_s21  ;;  %s1423_s20 = sshra.s32 %s283_s10, 4  ;;  %s1424_s20 = int_to_ptr.hbm [resolvable:$true] %s1423_s20 }
  0x23   : > { %s1425_s1 = scalar_lea.hbm %s1424_s20, 64  ;;  %p1427_p10 = pneg %p1677_p9 }
  0x24   : > { %p1426_p2 = scmp.ne.s32.totalorder %s1424_s20, %s1425_s1  ;;  %s1430_s22 = scalar_lea.hbm %s1816_s0, 128 }
  0x25   : > { %p1431_p0 = scmp.lt.s32.totalorder %s1424_s20, %s1816_s0  ;;  %p1432_p5 = scmp.lt.s32.totalorder %s1430_s22, %s1425_s1 }
  0x26   : > { %p1428_p12 = pnand %p1427_p10, %p1426_p2 }
  0x27   : > { %p1433_p7 = por %p1432_p5, %p1431_p0 }
  0x28   : > { %p1429_p13 = pneg %p1428_p12 }
  0x2a   : > { %p1434_p11 = pnand %p1433_p7, %p1429_p13 }
  0x2c   : > { %1437 = shalt.err (!%p1434_p11)
}
  0x2d   : > { %s1834_s21 = smov 4   ;;  %s1835_s11 = smov 64  }
  0x2e   : > { %1278 = dma.hbm_to_vmem [thread:$0]  (!%p1677_p9), %s283_s10, 1024, %s285_s14, %s273_s19, %s1835_s11, %s1835_s11, %s1834_s21  }
  0x2f   : > { %296 = sbr.rel (%p1619_p8) target bundleno = 601 (0x259), region = 48  ;;  %s1697_s15 = sand.u32 (!%p1619_p8), 1, %s1519_s25  }
  0x30   : > { %s1006_s1 = sshll.u32 (!%p1619_p8), %s1697_s15, 6  ;;  %s299_s20 = scalar_lea.sflag (!%p1619_p8), [#allocation3], %s1697_s15 }
  0x31   : > { %s1703_s23 = scalar_lea.vmem (!%p1619_p8), [#allocation2], %s1006_s1 }
  0x34   : > { %1498 = dma.done.wait (%p1606_p4), %s299_s20, 1024  }
  0x35   : > { %1500 = vsyncadd (%p1606_p4), %s299_s20, 4294966272 }
  0x36   : > { %1502 = dma.done.wait (%p46_p1), [#allocation6], 2048  }
  0x37   : > { %1504 = vsyncadd (%p46_p1), [#allocation6], 4294965248 }
  0x38   : > { %1506 = dma.done.wait (%p46_p1), [#allocation9], 1024  }
  0x39   : > { %1508 = vsyncadd (%p46_p1), [#allocation9], 4294966272  ;;  %v1160_v0 = vld [vmem:[#allocation5 + $0x38] sm:$0xff]  ;;  %v1159_v1 = vld [vmem:[#allocation5 + $0x30] sm:$0xff]  ;;  %s1772_s22 = scalar_lea.vmem [#allocation10], %s1006_s1  ;;  %s1177_s29 = sshll.u32 %s1597_s28, 6 }
  0x3a   : > { %483 = vmatpush.bf16.msra.mxu0 %v1160_v0  ;;  %1225 = vmatpush.bf16.msra.mxu3 %v1160_v0  ;;  %v1158_v2 = vld [vmem:[#allocation5 + $0x28] sm:$0xff]  ;;  %v1157_v3 = vld [vmem:[#allocation5 + $0x20] sm:$0xff]  ;;  %v1156_v4 = vld [vmem:[#allocation5 + $0x18] sm:$0xff]  ;;  %s890_s11 = scalar_lea.hbm %s1823_s7, %s1177_s29  ;;  %s891_s1 = sshll.u32 %s1772_s22, 4  ;;  %s892_s1 = int_to_ptr.vmem [resolvable:$true] %s891_s1 }
  0x3b   : > { %v1155_v5 = vld [vmem:[#allocation5 + $0x10] sm:$0xff]  ;;  %v1154_v6 = vld [vmem:[#allocation5 + $0x8] sm:$0xff]  ;;  %v1153_v7 = vld [vmem:[#allocation5] sm:$0xff]  ;;  %s893_s20 = sshll.u32 %s890_s11, 4  ;;  %s1473_s10 = scalar_lea.hbm %s1823_s7, 128  ;;  %s894_s20 = int_to_ptr.hbm [resolvable:$true] %s893_s20 }
  0x3c   : > { %v1145_v8 = vld [vmem:[%s1703_s23] sm:$0xff]  ;;  %v1151_v9 = vld [vmem:[%s1703_s23 + $0x30] sm:$0xff]  ;;  %v1146_v10 = vld [vmem:[%s1703_s23 + $0x8] sm:$0xff]  ;;  %s1467_s30 = sshra.s32 %s894_s20, 4  ;;  %s1468_s30 = int_to_ptr.hbm [resolvable:$true] %s1467_s30 }
  0x3d   : > { %v1152_v11 = vld [vmem:[%s1703_s23 + $0x38] sm:$0xff]  ;;  %v1147_v12 = vld [vmem:[%s1703_s23 + $0x10] sm:$0xff]  ;;  %v1166_v16 = vld [vmem:[#allocation7 + $0x28] sm:$0xff]  ;;  %s1469_s12 = scalar_lea.hbm %s1468_s30, 64  ;;  %p1474_p11 = scmp.lt.s32.totalorder %s1468_s30, %s1823_s7 }
  0x3e   : > { %484 = vmatpush.bf16.msra.mxu0 %v1159_v1  ;;  %1226 = vmatpush.bf16.msra.mxu3 %v1159_v1  ;;  %v1148_v13 = vld [vmem:[%s1703_s23 + $0x18] sm:$0xff]  ;;  %v1167_v15 = vld [vmem:[#allocation7 + $0x30] sm:$0xff]  ;;  %v1165_v17 = vld [vmem:[#allocation7 + $0x20] sm:$0xff]  ;;  %p1470_p1 = scmp.ne.s32.totalorder %s1468_s30, %s1469_s12  ;;  %p1475_p9 = scmp.lt.s32.totalorder %s1473_s10, %s1469_s12 }
  0x3f   : > { %v1168_v14 = vld [vmem:[#allocation7 + $0x38] sm:$0xff]  ;;  %v1149_v18 = vld [vmem:[%s1703_s23 + $0x20] sm:$0xff]  ;;  %v1150_v19 = vld [vmem:[%s1703_s23 + $0x28] sm:$0xff]  ;;  %s879_s23 = scalar_lea.sflag [#allocation4], %s1697_s15 }
  0x40   : > { %640 = vmatpush.bf16.msra.mxu1 %v1168_v14  ;;  %v1164_v20 = vld [vmem:[#allocation7 + $0x18] sm:$0xff]  ;;  %v1163_v21 = vld [vmem:[#allocation7 + $0x10] sm:$0xff]  ;;  %v1162_v22 = vld [vmem:[#allocation7 + $0x8] sm:$0xff]  ;;  %p1471_p4 = pnand %p1470_p1, %p1667_p3  ;;  %p1476_p2 = por %p1475_p9, %p1474_p11 }
  0x41   : > { %v1161_v23 = vld [vmem:[#allocation7] sm:$0xff] }
  0x42   : > { %485 = vmatpush.bf16.msra.mxu0 %v1158_v2  ;;  %1227 = vmatpush.bf16.msra.mxu3 %v1158_v2  ;;  %v1728_v25 = vld [vmem:[%s1818_s2] ss:$0 sm:$0xff]  ;;  %p1472_p8 = pneg %p1471_p4 }
  0x44   : > { %641 = vmatpush.bf16.msra.mxu1 %v1167_v15  ;;  %p1477_p10 = pnand %p1476_p2, %p1472_p8 }
  0x46   : > { %486 = vmatpush.bf16.msra.mxu0 %v1157_v3  ;;  %1228 = vmatpush.bf16.msra.mxu3 %v1157_v3 }
  0x48   : > { %642 = vmatpush.bf16.msra.mxu1 %v1166_v16 }
  0x4a   : > { %487 = vmatpush.bf16.msra.mxu0 %v1156_v4  ;;  %1229 = vmatpush.bf16.msra.mxu3 %v1156_v4 }
  0x4c   : > { %643 = vmatpush.bf16.msra.mxu1 %v1165_v17 }
  0x4e   : > { %488 = vmatpush.bf16.msra.mxu0 %v1155_v5  ;;  %1230 = vmatpush.bf16.msra.mxu3 %v1155_v5 }
  0x50   : > { %644 = vmatpush.bf16.msra.mxu1 %v1164_v20 }
  0x52   : > { %489 = vmatpush.bf16.msra.mxu0 %v1154_v6  ;;  %1231 = vmatpush.bf16.msra.mxu3 %v1154_v6 }
  0x54   : > { %645 = vmatpush.bf16.msra.mxu1 %v1163_v21 }
  0x56   : > { %490 = vmatpush.bf16.msra.mxu0 %v1153_v7  ;;  %1232 = vmatpush.bf16.msra.mxu3 %v1153_v7 }
  0x58   : > { %646 = vmatpush.bf16.msra.mxu1 %v1162_v22 }
  0x59   : > { %491 = vmatmul.bf16.vlgmr.msra.gmra.mxu0 %v1145_v8  ;;  %521 = vmatmul.bf16.vlgmr.msra.gmra.mxu3 %v1151_v9 }
  0x5a   : > { %1233 = vmatpush.bf16.msrb.mxu3 %v1168_v14 }
  0x5c   : > { %647 = vmatpush.bf16.msra.mxu1 %v1161_v23 }
  0x5e   : > { %1234 = vmatpush.bf16.msrb.mxu3 %v1167_v15 }
  0x62   : > { %1235 = vmatpush.bf16.msrb.mxu3 %v1166_v16  ;;  %v1176_v16 = vld [vmem:[#allocation8 + $0x38] sm:$0xff] }
  0x63   : > { %797 = vmatpush.bf16.msra.mxu2 %v1176_v16 }
  0x66   : > { %1236 = vmatpush.bf16.msrb.mxu3 %v1165_v17  ;;  %v1175_v17 = vld [vmem:[#allocation8 + $0x30] sm:$0xff] }
  0x67   : > { %798 = vmatpush.bf16.msra.mxu2 %v1175_v17 }
  0x69   : > { %496 = vmatmul.bf16.gmra.mxu0 %v1146_v10  ;;  %526 = vmatmul.bf16.gmra.mxu3 %v1152_v11 }
  0x6a   : > { %1237 = vmatpush.bf16.msrb.mxu3 %v1164_v20 }
  0x6e   : > { %1238 = vmatpush.bf16.msrb.mxu3 %v1163_v21 }
  0x72   : > { %1239 = vmatpush.bf16.msrb.mxu3 %v1162_v22 }
  0x76   : > { %1240 = vmatpush.bf16.msrb.mxu3 %v1161_v23 }
  0x79   : > { %501 = vmatmul.bf16.gmra.mxu0 %v1147_v12 }
  0x7a   : > { %1241 = vmatpush.bf16.msra.mxu3 %v1176_v16 }
  0x7e   : > { %1242 = vmatpush.bf16.msra.mxu3 %v1175_v17 }
  0x89   : > { %506 = vmatmul.bf16.gmra.mxu0 %v1148_v13 }
  0x99   : > { %511 = vmatmul.bf16.gmra.mxu0 %v1149_v18 }
  0xa9   : > { %516 = vmatmul.bf16.gmra.mxu0 %v1150_v19  ;;  %v1174_v19 = vld [vmem:[#allocation8 + $0x28] sm:$0xff] }
  0xaa   : > { %799 = vmatpush.bf16.msra.mxu2 %v1174_v19  ;;  %1243 = vmatpush.bf16.msra.mxu3 %v1174_v19 }
  0xd6   : > { %v492_v24 = vpop.f32.mrf.mxu0 }
  0xd7   : > { %v493_v26 = vadd.f32 %v1728_v25, %v492_v24  ;;  %v1173_v24 = vld [vmem:[#allocation8 + $0x20] sm:$0xff] }
  0xd8   : > { %800 = vmatpush.bf16.msra.mxu2 %v1173_v24  ;;  %1244 = vmatpush.bf16.msra.mxu3 %v1173_v24 }
  0xd9   : > { %v532_v29 = vmul.f32 0.1, %v493_v26 }
  0xdb   : > { %v548_v33 = vmax.f32 %v493_v26, %v532_v29 }
  0xdc   : > { %v522_v27 = vpop.f32.mrf.mxu3 }
  0xdd   : > { %v523_v31 = vadd.f32 %v1728_v25, %v522_v27 }
  0xde   : > { %v494_v28 = vpop.f32.mrf.mxu0 }
  0xdf   : > { %v495_v30 = vadd.f32 %v1728_v25, %v494_v28  ;;  %v544_v35 = vmul.f32 0.1, %v523_v31 }
  0xe1   : > { %v533_v32 = vmul.f32 0.1, %v495_v30  ;;  %v560_v40 = vmax.f32 %v523_v31, %v544_v35 }
  0xe3   : > { %v549_v34 = vmax.f32 %v495_v30, %v533_v32 }
  0xe4   : > { %v524_v36 = vpop.f32.mrf.mxu3 }
  0xe5   : > { %v564_v37 = vpack.c.bf16 %v549_v34, %v548_v33  ;;  %v525_v38 = vadd.f32 %v1728_v25, %v524_v36 }
  0xe6   : > { %v497_v39 = vpop.f32.mrf.mxu0 }
  0xe7   : > { %648 = vmatmul.bf16.vlgmr.msra.gmra.mxu1 %v564_v37  ;;  %v545_v41 = vmul.f32 0.1, %v525_v38  ;;  %v498_v43 = vadd.f32 %v1728_v25, %v497_v39  ;;  %v1171_v39 = vld [vmem:[#allocation8 + $0x10] sm:$0xff] }
  0xe9   : > { %v561_v42 = vmax.f32 %v525_v38, %v545_v41  ;;  %v534_v47 = vmul.f32 0.1, %v498_v43  ;;  %v1172_v38 = vld [vmem:[#allocation8 + $0x18] sm:$0xff]  ;;  %v1169_v41 = vld [vmem:[#allocation8] sm:$0xff] }
  0xea   : > { %801 = vmatpush.bf16.msra.mxu2 %v1172_v38  ;;  %1245 = vmatpush.bf16.msra.mxu3 %v1172_v38 }
  0xeb   : > { %v570_v44 = vpack.c.bf16 %v561_v42, %v560_v40  ;;  %v550_v51 = vmax.f32 %v498_v43, %v534_v47  ;;  %v1170_v40 = vld [vmem:[#allocation8 + $0x8] sm:$0xff] }
  0xec   : > { %v527_v45 = vpop.f32.mrf.mxu3 }
  0xed   : > { %678 = vmatmul.bf16.vlgmr.msrb.gmra.mxu3 %v570_v44  ;;  %v528_v49 = vadd.f32 %v1728_v25, %v527_v45 }
  0xee   : > { %v499_v46 = vpop.f32.mrf.mxu0  ;;  %802 = vmatpush.bf16.msra.mxu2 %v1171_v39  ;;  %1246 = vmatpush.bf16.msra.mxu3 %v1171_v39 }
  0xef   : > { %v500_v48 = vadd.f32 %v1728_v25, %v499_v46  ;;  %v546_v53 = vmul.f32 0.1, %v528_v49 }
  0xf1   : > { %v535_v50 = vmul.f32 0.1, %v500_v48  ;;  %v562_v58 = vmax.f32 %v528_v49, %v546_v53 }
  0xf2   : > { %803 = vmatpush.bf16.msra.mxu2 %v1170_v40  ;;  %1247 = vmatpush.bf16.msra.mxu3 %v1170_v40 }
  0xf3   : > { %v551_v52 = vmax.f32 %v500_v48, %v535_v50 }
  0xf4   : > { %v529_v54 = vpop.f32.mrf.mxu3 }
  0xf5   : > { %v565_v55 = vpack.c.bf16 %v551_v52, %v550_v51  ;;  %v530_v56 = vadd.f32 %v1728_v25, %v529_v54 }
  0xf6   : > { %v502_v57 = vpop.f32.mrf.mxu0  ;;  %804 = vmatpush.bf16.msra.mxu2 %v1169_v41  ;;  %1248 = vmatpush.bf16.msra.mxu3 %v1169_v41 }
  0xf7   : > { %653 = vmatmul.bf16.gmra.mxu1 %v565_v55  ;;  %v547_v59 = vmul.f32 0.1, %v530_v56  ;;  %v503_v61 = vadd.f32 %v1728_v25, %v502_v57 }
  0xf9   : > { %v563_v60 = vmax.f32 %v530_v56, %v547_v59  ;;  %v536_v0 = vmul.f32 0.1, %v503_v61 }
  0xfb   : > { %v571_v62 = vpack.c.bf16 %v563_v60, %v562_v58  ;;  %v552_v3 = vmax.f32 %v503_v61, %v536_v0 }
  0xfd   : > { %683 = vmatmul.bf16.gmra.mxu3 %v571_v62 }
  0xfe   : > { %v504_v63 = vpop.f32.mrf.mxu0 }
  0xff   : > { %v505_v1 = vadd.f32 %v1728_v25, %v504_v63 }
 0x101   : > { %v537_v2 = vmul.f32 0.1, %v505_v1 }
 0x103   : > { %v553_v4 = vmax.f32 %v505_v1, %v537_v2 }
 0x105   : > { %v566_v5 = vpack.c.bf16 %v553_v4, %v552_v3 }
 0x106   : > { %v507_v6 = vpop.f32.mrf.mxu0 }
 0x107   : > { %658 = vmatmul.bf16.gmra.mxu1 %v566_v5  ;;  %v508_v7 = vadd.f32 %v1728_v25, %v507_v6 }
 0x109   : > { %v538_v9 = vmul.f32 0.1, %v508_v7 }
 0x10b   : > { %v554_v12 = vmax.f32 %v508_v7, %v538_v9 }
 0x10e   : > { %v509_v8 = vpop.f32.mrf.mxu0 }
 0x10f   : > { %v510_v10 = vadd.f32 %v1728_v25, %v509_v8 }
 0x111   : > { %v539_v11 = vmul.f32 0.1, %v510_v10 }
 0x113   : > { %v555_v13 = vmax.f32 %v510_v10, %v539_v11 }
 0x115   : > { %v567_v14 = vpack.c.bf16 %v555_v13, %v554_v12 }
 0x116   : > { %v512_v15 = vpop.f32.mrf.mxu0 }
 0x117   : > { %663 = vmatmul.bf16.gmra.mxu1 %v567_v14  ;;  %v513_v18 = vadd.f32 %v1728_v25, %v512_v15 }
 0x119   : > { %v540_v21 = vmul.f32 0.1, %v513_v18 }
 0x11b   : > { %v556_v26 = vmax.f32 %v513_v18, %v540_v21 }
 0x11e   : > { %v514_v20 = vpop.f32.mrf.mxu0 }
 0x11f   : > { %v515_v22 = vadd.f32 %v1728_v25, %v514_v20 }
 0x121   : > { %v541_v23 = vmul.f32 0.1, %v515_v22 }
 0x123   : > { %v557_v27 = vmax.f32 %v515_v22, %v541_v23 }
 0x125   : > { %v568_v28 = vpack.c.bf16 %v557_v27, %v556_v26 }
 0x126   : > { %v517_v29 = vpop.f32.mrf.mxu0 }
 0x127   : > { %668 = vmatmul.bf16.gmra.mxu1 %v568_v28  ;;  %v518_v30 = vadd.f32 %v1728_v25, %v517_v29 }
 0x129   : > { %v542_v32 = vmul.f32 0.1, %v518_v30 }
 0x12b   : > { %v558_v35 = vmax.f32 %v518_v30, %v542_v32 }
 0x12e   : > { %v519_v31 = vpop.f32.mrf.mxu0 }
 0x12f   : > { %v520_v33 = vadd.f32 %v1728_v25, %v519_v31  ;;  %v1749_v25 = vld [vmem:[%s1820_s4] ss:$0 sm:$0xff] }
 0x131   : > { %v543_v34 = vmul.f32 0.1, %v520_v33 }
 0x133   : > { %v559_v36 = vmax.f32 %v520_v33, %v543_v34 }
 0x135   : > { %v569_v37 = vpack.c.bf16 %v559_v36, %v558_v35 }
 0x137   : > { %673 = vmatmul.bf16.gmra.mxu1 %v569_v37 }
 0x164   : > { %v649_v42 = vpop.f32.mrf.mxu1 }
 0x165   : > { %v650_v43 = vadd.f32 %v1749_v25, %v649_v42 }
 0x167   : > { %v689_v45 = vmul.f32 0.1, %v650_v43 }
 0x169   : > { %v705_v49 = vmax.f32 %v650_v43, %v689_v45 }
 0x16c   : > { %v651_v44 = vpop.f32.mrf.mxu1 }
 0x16d   : > { %v652_v46 = vadd.f32 %v1749_v25, %v651_v44 }
 0x16f   : > { %v690_v47 = vmul.f32 0.1, %v652_v46 }
 0x170   : > { %v679_v48 = vpop.f32.mrf.mxu3 }
 0x171   : > { %v706_v50 = vmax.f32 %v652_v46, %v690_v47  ;;  %v680_v52 = vadd.f32 %v1749_v25, %v679_v48 }
 0x173   : > { %v721_v51 = vpack.c.bf16 %v706_v50, %v705_v49  ;;  %v701_v54 = vmul.f32 0.1, %v680_v52 }
 0x174   : > { %v654_v53 = vpop.f32.mrf.mxu1 }
 0x175   : > { %805 = vmatmul.bf16.vlgmr.msra.gmra.mxu2 %v721_v51  ;;  %v655_v56 = vadd.f32 %v1749_v25, %v654_v53  ;;  %v717_v58 = vmax.f32 %v680_v52, %v701_v54  ;;  %v1332_v52 = vld [vmem:[%s1822_s6] ss:$0 sm:$0xff] }
 0x177   : > { %v691_v61 = vmul.f32 0.1, %v655_v56 }
 0x178   : > { %v681_v55 = vpop.f32.mrf.mxu3 }
 0x179   : > { %v682_v57 = vadd.f32 %v1749_v25, %v681_v55  ;;  %v707_v3 = vmax.f32 %v655_v56, %v691_v61 }
 0x17b   : > { %v702_v59 = vmul.f32 0.1, %v682_v57 }
 0x17c   : > { %v656_v60 = vpop.f32.mrf.mxu1 }
 0x17d   : > { %v657_v62 = vadd.f32 %v1749_v25, %v656_v60  ;;  %v718_v63 = vmax.f32 %v682_v57, %v702_v59 }
 0x17f   : > { %v692_v0 = vmul.f32 0.1, %v657_v62  ;;  %v727_v1 = vpack.c.bf16 %v718_v63, %v717_v58 }
 0x180   : > { %v684_v2 = vpop.f32.mrf.mxu3 }
 0x181   : > { %v708_v4 = vmax.f32 %v657_v62, %v692_v0  ;;  %835 = vmatmul.bf16.vlgmr.msra.gmra.mxu3 %v727_v1  ;;  %v685_v6 = vadd.f32 %v1749_v25, %v684_v2 }
 0x183   : > { %v722_v5 = vpack.c.bf16 %v708_v4, %v707_v3  ;;  %v703_v8 = vmul.f32 0.1, %v685_v6 }
 0x184   : > { %v659_v7 = vpop.f32.mrf.mxu1 }
 0x185   : > { %810 = vmatmul.bf16.gmra.mxu2 %v722_v5  ;;  %v660_v10 = vadd.f32 %v1749_v25, %v659_v7  ;;  %v719_v12 = vmax.f32 %v685_v6, %v703_v8 }
 0x187   : > { %v693_v15 = vmul.f32 0.1, %v660_v10 }
 0x188   : > { %v686_v9 = vpop.f32.mrf.mxu3 }
 0x189   : > { %v687_v11 = vadd.f32 %v1749_v25, %v686_v9  ;;  %v709_v20 = vmax.f32 %v660_v10, %v693_v15 }
 0x18b   : > { %v704_v13 = vmul.f32 0.1, %v687_v11 }
 0x18c   : > { %v661_v14 = vpop.f32.mrf.mxu1 }
 0x18d   : > { %v662_v16 = vadd.f32 %v1749_v25, %v661_v14  ;;  %v720_v17 = vmax.f32 %v687_v11, %v704_v13 }
 0x18f   : > { %v694_v18 = vmul.f32 0.1, %v662_v16  ;;  %v728_v19 = vpack.c.bf16 %v720_v17, %v719_v12 }
 0x191   : > { %v710_v21 = vmax.f32 %v662_v16, %v694_v18  ;;  %840 = vmatmul.bf16.gmra.mxu3 %v728_v19 }
 0x193   : > { %v723_v22 = vpack.c.bf16 %v710_v21, %v709_v20 }
 0x194   : > { %v664_v23 = vpop.f32.mrf.mxu1 }
 0x195   : > { %815 = vmatmul.bf16.gmra.mxu2 %v723_v22  ;;  %v665_v24 = vadd.f32 %v1749_v25, %v664_v23 }
 0x197   : > { %v695_v27 = vmul.f32 0.1, %v665_v24 }
 0x199   : > { %v711_v30 = vmax.f32 %v665_v24, %v695_v27 }
 0x19c   : > { %v666_v26 = vpop.f32.mrf.mxu1 }
 0x19d   : > { %v667_v28 = vadd.f32 %v1749_v25, %v666_v26 }
 0x19f   : > { %v696_v29 = vmul.f32 0.1, %v667_v28 }
 0x1a1   : > { %v712_v31 = vmax.f32 %v667_v28, %v696_v29 }
 0x1a3   : > { %v724_v32 = vpack.c.bf16 %v712_v31, %v711_v30 }
 0x1a4   : > { %v669_v33 = vpop.f32.mrf.mxu1 }
 0x1a5   : > { %820 = vmatmul.bf16.gmra.mxu2 %v724_v32  ;;  %v670_v34 = vadd.f32 %v1749_v25, %v669_v33 }
 0x1a7   : > { %v697_v36 = vmul.f32 0.1, %v670_v34 }
 0x1a9   : > { %v713_v39 = vmax.f32 %v670_v34, %v697_v36 }
 0x1ac   : > { %v671_v35 = vpop.f32.mrf.mxu1 }
 0x1ad   : > { %v672_v37 = vadd.f32 %v1749_v25, %v671_v35 }
 0x1af   : > { %v698_v38 = vmul.f32 0.1, %v672_v37 }
 0x1b1   : > { %v714_v40 = vmax.f32 %v672_v37, %v698_v38 }
 0x1b3   : > { %v725_v41 = vpack.c.bf16 %v714_v40, %v713_v39 }
 0x1b4   : > { %v674_v42 = vpop.f32.mrf.mxu1 }
 0x1b5   : > { %825 = vmatmul.bf16.gmra.mxu2 %v725_v41  ;;  %v675_v43 = vadd.f32 %v1749_v25, %v674_v42 }
 0x1b7   : > { %v699_v45 = vmul.f32 0.1, %v675_v43 }
 0x1b9   : > { %v715_v48 = vmax.f32 %v675_v43, %v699_v45 }
 0x1bc   : > { %v676_v44 = vpop.f32.mrf.mxu1 }
 0x1bd   : > { %v677_v46 = vadd.f32 %v1749_v25, %v676_v44 }
 0x1bf   : > { %v700_v47 = vmul.f32 0.1, %v677_v46 }
 0x1c1   : > { %v716_v49 = vmax.f32 %v677_v46, %v700_v47 }
 0x1c3   : > { %v726_v50 = vpack.c.bf16 %v716_v49, %v715_v48 }
 0x1c5   : > { %830 = vmatmul.bf16.gmra.mxu2 %v726_v50 }
 0x1f8   : > { %v806_v51 = vpop.f32.mrf.mxu2 }
 0x1f9   : > { %v807_v54 = vadd.f32 %v1332_v52, %v806_v51 }
 0x200   : > { %v808_v53 = vpop.f32.mrf.mxu2 }
 0x201   : > { %v809_v55 = vadd.f32 %v1332_v52, %v808_v53 }
 0x203   : > { %v1181_v56 = vpack.c.bf16 %v809_v55, %v807_v54 }
 0x204   : > { %v836_v57 = vpop.f32.mrf.mxu3 }
 0x205   : > { %1182 = vst [vmem:[%s1772_s22] sm:$0xff] %v1181_v56   ;;  %v837_v58 = vadd.f32 %v1332_v52, %v836_v57 }
 0x208   : > { %v811_v25 = vpop.f32.mrf.mxu2 }
 0x209   : > { %v812_v63 = vadd.f32 %v1332_v52, %v811_v25 }
 0x20c   : > { %v838_v59 = vpop.f32.mrf.mxu3 }
 0x20d   : > { %v839_v60 = vadd.f32 %v1332_v52, %v838_v59 }
 0x20f   : > { %v1211_v61 = vpack.c.bf16 %v839_v60, %v837_v58 }
 0x210   : > { %v813_v62 = vpop.f32.mrf.mxu2 }
 0x211   : > { %v814_v0 = vadd.f32 %v1332_v52, %v813_v62  ;;  %1223 = vst [vmem:[%s1772_s22 + $0x30] sm:$0xff] %v1211_v61  }
 0x213   : > { %v1186_v1 = vpack.c.bf16 %v814_v0, %v812_v63 }
 0x214   : > { %v841_v2 = vpop.f32.mrf.mxu3 }
 0x215   : > { %1218 = vst [vmem:[%s1772_s22 + $0x8] sm:$0xff] %v1186_v1   ;;  %v842_v4 = vadd.f32 %v1332_v52, %v841_v2 }
 0x218   : > { %v816_v3 = vpop.f32.mrf.mxu2 }
 0x219   : > { %v817_v9 = vadd.f32 %v1332_v52, %v816_v3 }
 0x21c   : > { %v843_v5 = vpop.f32.mrf.mxu3 }
 0x21d   : > { %v844_v6 = vadd.f32 %v1332_v52, %v843_v5 }
 0x21f   : > { %v1216_v7 = vpack.c.bf16 %v844_v6, %v842_v4 }
 0x220   : > { %v818_v8 = vpop.f32.mrf.mxu2 }
 0x221   : > { %v819_v10 = vadd.f32 %v1332_v52, %v818_v8  ;;  %1224 = vst [vmem:[%s1772_s22 + $0x38] sm:$0xff] %v1216_v7  }
 0x223   : > { %v1191_v11 = vpack.c.bf16 %v819_v10, %v817_v9 }
 0x225   : > { %1219 = vst [vmem:[%s1772_s22 + $0x10] sm:$0xff] %v1191_v11  }
 0x228   : > { %v821_v12 = vpop.f32.mrf.mxu2 }
 0x229   : > { %v822_v14 = vadd.f32 %v1332_v52, %v821_v12 }
 0x230   : > { %v823_v13 = vpop.f32.mrf.mxu2 }
 0x231   : > { %v824_v15 = vadd.f32 %v1332_v52, %v823_v13 }
 0x233   : > { %v1196_v16 = vpack.c.bf16 %v824_v15, %v822_v14 }
 0x235   : > { %1220 = vst [vmem:[%s1772_s22 + $0x18] sm:$0xff] %v1196_v16  }
 0x238   : > { %v826_v17 = vpop.f32.mrf.mxu2 }
 0x239   : > { %v827_v19 = vadd.f32 %v1332_v52, %v826_v17 }
 0x240   : > { %v828_v18 = vpop.f32.mrf.mxu2 }
 0x241   : > { %v829_v20 = vadd.f32 %v1332_v52, %v828_v18 }
 0x243   : > { %v1201_v21 = vpack.c.bf16 %v829_v20, %v827_v19 }
 0x245   : > { %1221 = vst [vmem:[%s1772_s22 + $0x20] sm:$0xff] %v1201_v21  }
 0x248   : > { %v831_v22 = vpop.f32.mrf.mxu2 }
 0x249   : > { %v832_v24 = vadd.f32 %v1332_v52, %v831_v22 }
 0x250   : > { %v833_v23 = vpop.f32.mrf.mxu2 }
 0x251   : > { %v834_v26 = vadd.f32 %v1332_v52, %v833_v23 }
 0x253   : > { %v1206_v27 = vpack.c.bf16 %v834_v26, %v832_v24 }
 0x255   : > { %1222 = vst [vmem:[%s1772_s22 + $0x28] sm:$0xff] %v1206_v27  }
 0x256   : > { %1480 = shalt.err (!%p1477_p10)
}
 0x257   : > { %s1534_s15 = smov 64   ;;  %s1535_s22 = smov 4  }
 0x258   : > { %1263 = dma.vmem_to_hbm [thread:$0]  (%p1667_p3), %s892_s1, 1024, %s894_s20, %s879_s23, %s1534_s15, %s1534_s15, %s1535_s22  }
 0x259 PF: > { %s908_s29 = sand.u32 1, %s1515_s24   ;;  %p1836_p12 = scmp.ge.s32.totalorder %s1527_s27, 2 }
 0x25a   : > { %s909_s9 = scalar_lea.sflag [#allocation4], %s908_s29 }
 0x25b   : > { %p1280_p13 = pnand %p1836_p12, %p1611_p6 }
 0x25d   : > { %p1281_p0 = pneg %p1280_p13 }
 0x25f   : > { %1510 = dma.done.wait (%p1281_p0), %s909_s9, 1024  }
 0x260   : > { %1512 = vsyncadd (%p1281_p0), %s909_s9, 4294966272  ;;  %p22_p5 = scmp.ge.s32.totalorder %s1649_s13, 4   ;;  %s1837_s24 = smov %s1519_s25 }
 0x261   : > { %s1838_s25 = smov %s1523_s26  ;;  %s1839_s26 = smov %s1663_s17 }
 0x262   : > { %s1840_s27 = smov %s1649_s13  ;;  %24 = sbr.rel (!%p22_p5) target bundleno = 9 (0x9), region = 105 }
 0x267   :  { %915 = vsyncpa [#allocation3], 1 }
 0x268   :  { %917 = vsyncpa [#allocation3 + $0x1], 1 }
 0x269   :  { %918 = vsyncpa [#allocation6], 1 }
 0x26a   :  { %919 = vsyncpa [#allocation9], 1 }
 0x26b   :  { %920 = vsyncpa [#allocation4], 1 }
 0x26c   :  { %922 = vsyncpa [#allocation4 + $0x1], 1 }

</bundles_post_ra>
